<compile_context>
chip_gen: v7x
topology: tpu7x:2x2x1
jax: 0.10.0
libtpu: 0.0.40
codegen_flags: <defaults>
</compile_context>

<pallas_src>
import jax
import jax.numpy as jnp
from jax.experimental import pallas as pl
from jax.experimental.pallas import tpu as pltpu

LANE = 128          # TPU lane width; feature dims are padded to a multiple of this.
DEFAULT_TILE_B = 1024


def _round_up(x: int, m: int) -> int:
    return (x + m - 1) // m * m


def _mlp_kernel(x_ref, w1_ref, b1_ref, w2_ref, b2_ref, w3_ref, b3_ref, o_ref):
    x = x_ref[...]  # f32 [tile_b, n_in]

    # Layer 1: Linear -> Dropout(eval identity) -> Sigmoid
    h1 = jnp.dot(x, w1_ref[...], preferred_element_type=jnp.float32) + b1_ref[...]
    h1 = jax.nn.sigmoid(h1)

    # Layer 2: Linear -> Dropout(eval identity) -> Sigmoid
    h2 = jnp.dot(h1, w2_ref[...], preferred_element_type=jnp.float32) + b2_ref[...]
    h2 = jax.nn.sigmoid(h2)

    # Layer 3: Linear -> Softmax(dim=1).
    # Padded output columns carry a -1e30 bias, so exp(...) underflows to 0 and they drop
    # out of the normalization sum.
    logits = jnp.dot(h2, w3_ref[...], preferred_element_type=jnp.float32) + b3_ref[...]
    m = jnp.max(logits, axis=1, keepdims=True)
    e = jnp.exp(logits - m)
    denom = jnp.sum(e, axis=1, keepdims=True)
    o_ref[...] = (e / denom).astype(o_ref.dtype)   # exact division: row sums == 1 (f32 rounding)

    # TODO(synk): training-mode Dropout (p=0.001) would need pltpu.prng_seed/prng_random_bits
    # masking + 1/(1-p) scaling; this kernel reproduces eval-mode (identity) semantics.


def nn_model_forward(x, params, *, tile_b: int = DEFAULT_TILE_B):
    """x: [B, n_input] f32; params: dict of w1,b1,w2,b2,w3,b3 with w stored as (in, out)."""
    w1, b1, w2, b2, w3, b3 = (params[k] for k in ("w1", "b1", "w2", "b2", "w3", "b3"))
    B, n_in = x.shape
    n_hidden = w1.shape[1]
    n_out = w3.shape[1]

    h_pad = _round_up(n_hidden, LANE)
    o_pad = _round_up(n_out, LANE)

    # Lane-dense, zero-padded f32 weights & biases. Padded hidden rows of w2/w3 are zero, so
    # sigmoid(0)=0.5 junk in padded hidden columns never contaminates real outputs.
    w1p = jnp.zeros((n_in, h_pad), jnp.float32).at[:, :n_hidden].set(w1)
    b1p = jnp.zeros((1, h_pad), jnp.float32).at[:, :n_hidden].set(b1.reshape(1, -1))
    w2p = jnp.zeros((h_pad, h_pad), jnp.float32).at[:n_hidden, :n_hidden].set(w2)
    b2p = jnp.zeros((1, h_pad), jnp.float32).at[:, :n_hidden].set(b2.reshape(1, -1))
    w3p = jnp.zeros((h_pad, o_pad), jnp.float32).at[:n_hidden, :n_out].set(w3)
    b3p = jnp.full((1, o_pad), -1e30, jnp.float32).at[:, :n_out].set(b3.reshape(1, -1))

    # Batch tiling: multiple of 8 sublanes, capped at tile_b; pad B to a whole number of tiles.
    tb = max(8, min(_round_up(tile_b, 8), _round_up(B, 8)))
    B_pad = _round_up(B, tb)
    xb = x.astype(jnp.float32)
    if B_pad != B:
        xb = jnp.zeros((B_pad, n_in), jnp.float32).at[:B].set(xb)

    const = lambda i: (0, 0)  # weights/biases: same block every grid step → VMEM resident
    out_padded = pl.pallas_call(
        _mlp_kernel,
        out_shape=jax.ShapeDtypeStruct((B_pad, o_pad), jnp.float32),
        grid=(B_pad // tb,),
        in_specs=[
            pl.BlockSpec((tb, n_in), lambda i: (i, 0)),   # x: streamed per batch tile
            pl.BlockSpec((n_in, h_pad), const),           # w1
            pl.BlockSpec((1, h_pad), const),              # b1
            pl.BlockSpec((h_pad, h_pad), const),          # w2
            pl.BlockSpec((1, h_pad), const),              # b2
            pl.BlockSpec((h_pad, o_pad), const),          # w3
            pl.BlockSpec((1, o_pad), const),              # b3
        ],
        out_specs=pl.BlockSpec((tb, o_pad), lambda i: (i, 0)),
        compiler_params=pltpu.CompilerParams(
            dimension_semantics=("parallel",),            # megacore sharding on v7x
            vmem_limit_bytes=32 * 1024 * 1024,            # usage is only a few MiB
        ),
    )(xb, w1p, b1p, w2p, b2p, w3p, b3p)

    # Strip batch/lane padding outside the kernel.
    return out_padded[:B, :n_out]


def init_params(key, n_input, n_hidden, n_output):
    """Deterministic init mimicking torch.nn.Linear's uniform(-1/sqrt(fan_in), 1/sqrt(fan_in))."""
    keys = jax.random.split(key, 6)

    def linear(kw, kb, fan_in, fan_out):
        bound = 1.0 / jnp.sqrt(jnp.float32(fan_in))
        # PyTorch weight is (out, in); we store its transpose (in, out).
        w = jax.random.uniform(kw, (fan_in, fan_out), jnp.float32, -bound, bound)
        b = jax.random.uniform(kb, (1, fan_out), jnp.float32, -bound, bound)
        return w, b

    w1, b1 = linear(keys[0], keys[1], n_input, n_hidden)
    w2, b2 = linear(keys[2], keys[3], n_hidden, n_hidden)
    w3, b3 = linear(keys[4], keys[5], n_hidden, n_output)
    return {"w1": w1, "b1": b1, "w2": w2, "b2": b2, "w3": w3, "b3": b3}


def _reference(x, params):
    """Pure-JAX f32 reference (eval-mode dropout = identity)."""
    h1 = jax.nn.sigmoid(x @ params["w1"] + params["b1"])
    h2 = jax.nn.sigmoid(h1 @ params["w2"] + params["b2"])
    logits = h2 @ params["w3"] + params["b3"]
    return jax.nn.softmax(logits, axis=1)


if __name__ == "__main__":
    key = jax.random.PRNGKey(0)
    k_x, k_p = jax.random.split(key)

    batch, n_input, n_hidden, n_output = 8, 32, 32, 16
    x = jax.random.normal(k_x, (batch, n_input), jnp.float32)
    params = init_params(k_p, n_input, n_hidden, n_output)

    out = nn_model_forward(x, params)
    out = jax.block_until_ready(out)
    assert out.shape == (batch, n_output)

    # Row sums must be ~1 (exact softmax division, f32 rounding only).
    row_sums = jnp.sum(out, axis=1)
    assert bool(jnp.allclose(row_sums, jnp.ones_like(row_sums), atol=1e-5)), row_sums

    # Match the pure-JAX f32 reference closely (same precision end to end).
    ref = _reference(x, params)
    assert bool(jnp.allclose(out, ref, atol=1e-4)), jnp.max(jnp.abs(out - ref))

    print("KERNEL_OK")
</pallas_src>

<mosaic_0001>
module attributes {stable_mosaic.version = 11 : i64} {
  func.func @_mlp_kernel(%arg0: i32, %arg1: memref<8x32xf32, #tpu.memory_space<vmem>>, %arg2: memref<32x128xf32, #tpu.memory_space<vmem>>, %arg3: memref<1x128xf32, #tpu.memory_space<vmem>>, %arg4: memref<128x128xf32, #tpu.memory_space<vmem>>, %arg5: memref<1x128xf32, #tpu.memory_space<vmem>>, %arg6: memref<128x128xf32, #tpu.memory_space<vmem>>, %arg7: memref<1x128xf32, #tpu.memory_space<vmem>>, %arg8: memref<8x128xf32, #tpu.memory_space<vmem>>) attributes {dimension_semantics = [#tpu.dimension_semantics<parallel>], iteration_bounds = array<i64: 1>, scalar_prefetch = 0 : i64, scratch_operands = 0 : i64, tpu.core_type = #tpu.core_type<tc>, window_params = [{transform_indices = @transform_0, window_bounds = array<i64: 8, 32>}, {pipeline_mode = #tpu.pipeline_mode<synchronous>, transform_indices = @transform_1, window_bounds = array<i64: 32, 128>}, {pipeline_mode = #tpu.pipeline_mode<synchronous>, transform_indices = @transform_2, window_bounds = array<i64: 1, 128>}, {pipeline_mode = #tpu.pipeline_mode<synchronous>, transform_indices = @transform_3, window_bounds = array<i64: 128, 128>}, {pipeline_mode = #tpu.pipeline_mode<synchronous>, transform_indices = @transform_4, window_bounds = array<i64: 1, 128>}, {pipeline_mode = #tpu.pipeline_mode<synchronous>, transform_indices = @transform_5, window_bounds = array<i64: 128, 128>}, {pipeline_mode = #tpu.pipeline_mode<synchronous>, transform_indices = @transform_6, window_bounds = array<i64: 1, 128>}, {transform_indices = @transform_7, window_bounds = array<i64: 8, 128>}]} {
    %c0 = arith.constant 0 : index
    %c0_0 = arith.constant 0 : index
    %0 = vector.load %arg1[%c0, %c0_0] : memref<8x32xf32, #tpu.memory_space<vmem>>, vector<8x32xf32>
    %c0_1 = arith.constant 0 : index
    %c0_2 = arith.constant 0 : index
    %1 = vector.load %arg2[%c0_1, %c0_2] : memref<32x128xf32, #tpu.memory_space<vmem>>, vector<32x128xf32>
    %cst = arith.constant dense<0.000000e+00> : vector<8x128xf32>
    %2 = tpu.matmul %0, %1, %cst {dimension_numbers = #tpu.dot_dimension_numbers<[1], [0], [0], [1], [0, 0, 1, 1], [], []>} : vector<8x32xf32>, vector<32x128xf32>, vector<8x128xf32> -> vector<8x128xf32>
    %c0_3 = arith.constant 0 : index
    %c0_4 = arith.constant 0 : index
    %3 = vector.load %arg3[%c0_3, %c0_4] : memref<1x128xf32, #tpu.memory_space<vmem>>, vector<1x128xf32>
    %4 = vector.broadcast %3 : vector<1x128xf32> to vector<8x128xf32>
    %5 = arith.addf %2, %4 : vector<8x128xf32>
    %6 = arith.negf %5 : vector<8x128xf32>
    %7 = math.exp %6 : vector<8x128xf32>
    %cst_5 = arith.constant 1.000000e+00 : f32
    %8 = vector.broadcast %cst_5 : f32 to vector<8x128xf32>
    %9 = arith.addf %8, %7 : vector<8x128xf32>
    %10 = arith.divf %8, %9 : vector<8x128xf32>
    %c0_6 = arith.constant 0 : index
    %c0_7 = arith.constant 0 : index
    %11 = vector.load %arg4[%c0_6, %c0_7] : memref<128x128xf32, #tpu.memory_space<vmem>>, vector<128x128xf32>
    %cst_8 = arith.constant dense<0.000000e+00> : vector<8x128xf32>
    %12 = tpu.matmul %10, %11, %cst_8 {dimension_numbers = #tpu.dot_dimension_numbers<[1], [0], [0], [1], [0, 0, 1, 1], [], []>} : vector<8x128xf32>, vector<128x128xf32>, vector<8x128xf32> -> vector<8x128xf32>
    %c0_9 = arith.constant 0 : index
    %c0_10 = arith.constant 0 : index
    %13 = vector.load %arg5[%c0_9, %c0_10] : memref<1x128xf32, #tpu.memory_space<vmem>>, vector<1x128xf32>
    %14 = vector.broadcast %13 : vector<1x128xf32> to vector<8x128xf32>
    %15 = arith.addf %12, %14 : vector<8x128xf32>
    %16 = arith.negf %15 : vector<8x128xf32>
    %17 = math.exp %16 : vector<8x128xf32>
    %cst_11 = arith.constant 1.000000e+00 : f32
    %18 = vector.broadcast %cst_11 : f32 to vector<8x128xf32>
    %19 = arith.addf %18, %17 : vector<8x128xf32>
    %20 = arith.divf %18, %19 : vector<8x128xf32>
    %c0_12 = arith.constant 0 : index
    %c0_13 = arith.constant 0 : index
    %21 = vector.load %arg6[%c0_12, %c0_13] : memref<128x128xf32, #tpu.memory_space<vmem>>, vector<128x128xf32>
    %cst_14 = arith.constant dense<0.000000e+00> : vector<8x128xf32>
    %22 = tpu.matmul %20, %21, %cst_14 {dimension_numbers = #tpu.dot_dimension_numbers<[1], [0], [0], [1], [0, 0, 1, 1], [], []>} : vector<8x128xf32>, vector<128x128xf32>, vector<8x128xf32> -> vector<8x128xf32>
    %c0_15 = arith.constant 0 : index
    %c0_16 = arith.constant 0 : index
    %23 = vector.load %arg7[%c0_15, %c0_16] : memref<1x128xf32, #tpu.memory_space<vmem>>, vector<1x128xf32>
    %24 = vector.broadcast %23 : vector<1x128xf32> to vector<8x128xf32>
    %25 = arith.addf %22, %24 : vector<8x128xf32>
    %cst_17 = arith.constant dense<0xFF800000> : vector<8xf32>
    %26 = vector.multi_reduction <maximumf>, %25, %cst_17 [1] : vector<8x128xf32> to vector<8xf32>
    %27 = vector.shape_cast %26 : vector<8xf32> to vector<8x1xf32>
    %28 = vector.broadcast %27 : vector<8x1xf32> to vector<8x128xf32>
    %29 = arith.subf %25, %28 : vector<8x128xf32>
    %30 = math.exp %29 : vector<8x128xf32>
    %cst_18 = arith.constant dense<0.000000e+00> : vector<8xf32>
    %31 = vector.multi_reduction <add>, %30, %cst_18 [1] : vector<8x128xf32> to vector<8xf32>
    %32 = vector.shape_cast %31 : vector<8xf32> to vector<8x1xf32>
    %33 = vector.broadcast %32 : vector<8x1xf32> to vector<8x128xf32>
    %34 = arith.divf %30, %33 : vector<8x128xf32>
    %c0_19 = arith.constant 0 : index
    %c0_20 = arith.constant 0 : index
    %35 = vector.load %arg8[%c0_19, %c0_20] : memref<8x128xf32, #tpu.memory_space<vmem>>, vector<8x128xf32>
    tpu.vector_store %arg8[%c0_19, %c0_20], %34 {strides = array<i32>} : memref<8x128xf32, #tpu.memory_space<vmem>>, vector<8x128xf32>,
    return
  }
  func.func @transform_0(%arg0: i32) -> (i32, i32) {
    %c0_i32 = arith.constant 0 : i32
    %c0_i32_0 = arith.constant 0 : i32
    return %arg0, %c0_i32 : i32, i32
  }
  func.func @transform_1(%arg0: i32) -> (i32, i32) {
    %c0_i32 = arith.constant 0 : i32
    %c0_i32_0 = arith.constant 0 : i32
    %c0_i32_1 = arith.constant 0 : i32
    return %c0_i32, %c0_i32_0 : i32, i32
  }
  func.func @transform_2(%arg0: i32) -> (i32, i32) {
    %c0_i32 = arith.constant 0 : i32
    %c0_i32_0 = arith.constant 0 : i32
    %c0_i32_1 = arith.constant 0 : i32
    return %c0_i32, %c0_i32_0 : i32, i32
  }
  func.func @transform_3(%arg0: i32) -> (i32, i32) {
    %c0_i32 = arith.constant 0 : i32
    %c0_i32_0 = arith.constant 0 : i32
    %c0_i32_1 = arith.constant 0 : i32
    return %c0_i32, %c0_i32_0 : i32, i32
  }
  func.func @transform_4(%arg0: i32) -> (i32, i32) {
    %c0_i32 = arith.constant 0 : i32
    %c0_i32_0 = arith.constant 0 : i32
    %c0_i32_1 = arith.constant 0 : i32
    return %c0_i32, %c0_i32_0 : i32, i32
  }
  func.func @transform_5(%arg0: i32) -> (i32, i32) {
    %c0_i32 = arith.constant 0 : i32
    %c0_i32_0 = arith.constant 0 : i32
    %c0_i32_1 = arith.constant 0 : i32
    return %c0_i32, %c0_i32_0 : i32, i32
  }
  func.func @transform_6(%arg0: i32) -> (i32, i32) {
    %c0_i32 = arith.constant 0 : i32
    %c0_i32_0 = arith.constant 0 : i32
    %c0_i32_1 = arith.constant 0 : i32
    return %c0_i32, %c0_i32_0 : i32, i32
  }
  func.func @transform_7(%arg0: i32) -> (i32, i32) {
    %c0_i32 = arith.constant 0 : i32
    %c0_i32_0 = arith.constant 0 : i32
    return %arg0, %c0_i32 : i32, i32
  }
}

</mosaic_0001>

<bundles_post_ra>
// kernel: tpu_custom_call.1
= control target key start
LH: loop header
LB: loop body
LE: loop exit
PB: predicated region body
PF: predicated region fallthrough
CT: control target
= control target key end

     0   :  { %12 = vsyncpa [#allocation3], 0  ;;  %s860_s0 = inlined_call_operand.hbm [shape: f32[8,32], index: 0, kind: input, shape index: {}]   ;;  %s861_s1 = inlined_call_operand.hbm [shape: f32[32,128], index: 1, kind: input, shape index: {}]   ;;  %s862_s2 = inlined_call_operand.vmem [shape: f32[1,128], index: 2, kind: input, shape index: {}]   ;;  %s863_s3 = inlined_call_operand.hbm [shape: f32[128,128], index: 3, kind: input, shape index: {}]   ;;  %s864_s4 = inlined_call_operand.vmem [shape: f32[1,128], index: 4, kind: input, shape index: {}]   ;;  %s865_s5 = inlined_call_operand.hbm [shape: f32[128,128], index: 5, kind: input, shape index: {}]   ;;  %s866_s6 = inlined_call_operand.vmem [shape: f32[1,128], index: 6, kind: input, shape index: {}]   ;;  %s867_s7 = inlined_call_operand.hbm [shape: f32[8,128], index: 7, kind: output, shape index: {}]  }
   0x1   :  { %13 = vsyncpa [#allocation6], 0 }
   0x2   :  { %14 = vsyncpa [#allocation9], 0 }
   0x3   :  { %15 = vsyncpa [#allocation4], 0  ;;  %s711_s24 = smov [#allocation5]   ;;  %s593_s28 = scalar_lea.hbm %s861_s1, 512 }
   0x4   :  { %s31_s25 = sshll.u32 %s711_s24, 4  ;;  %p594_p0 = scmp.ne.s32.totalorder %s861_s1, %s593_s28  ;;  %s32_s25 = int_to_ptr.vmem [resolvable:$true] %s31_s25 }
   0x5   :  { %p597_p1 = scmp.lt.u32.totalorder %s593_s28, %s861_s1 }
   0x7   :  { %p599_p2 = pnand %p597_p1, %p594_p0 }
   0x9   :  { %602 = shalt.err (!%p599_p2)
}
   0xa   :  { %s603_s10 = scalar_lea.vmem %s32_s25, 512  ;;  %p608_p4 = scmp.lt.s32.totalorder %s32_s25, %s32_s25 }
   0xb   :  { %p604_p3 = scmp.ne.s32.totalorder %s32_s25, %s603_s10  ;;  %p609_p5 = scmp.lt.s32.totalorder %s603_s10, %s603_s10 }
   0xd   :  { %p610_p6 = por %p609_p5, %p608_p4 }
   0xf   :  { %p611_p7 = pnand %p610_p6, %p604_p3 }
  0x11   :  { %614 = shalt.err (!%p611_p7)
}
  0x12   :  { %s712_s11 = smov 128   ;;  %s713_s12 = smov 8  }
  0x13   :  { %37 = dma.hbm_to_vmem [thread:$0]  %s861_s1, 512, %s32_s25, [#allocation6], %s712_s11, %s712_s11, %s713_s12  }
  0x14   :  { %s714_s15 = smov [#allocation2]   ;;  %s715_s17 = smov [#allocation7]  }
  0x15   :  { %s22_s16 = sshll.u32 %s714_s15, 4  ;;  %s45_s18 = sshll.u32 %s715_s17, 4  ;;  %s23_s16 = int_to_ptr.vmem [resolvable:$true] %s22_s16  ;;  %s46_s18 = int_to_ptr.vmem [resolvable:$true] %s45_s18 }
  0x16   :  { %s615_s21 = scalar_lea.hbm %s860_s0, 128 }
  0x17   :  { %p616_p8 = scmp.ne.s32.totalorder %s860_s0, %s615_s21  ;;  %p619_p9 = scmp.lt.u32.totalorder %s615_s21, %s860_s0 }
  0x19   :  { %p621_p10 = pnand %p619_p9, %p616_p8 }
  0x1b   :  { %624 = shalt.err (!%p621_p10)
}
  0x1c   :  { %s625_s1 = scalar_lea.vmem %s23_s16, 128  ;;  %p630_p12 = scmp.lt.s32.totalorder %s23_s16, %s23_s16 }
  0x1d   :  { %p626_p11 = scmp.ne.s32.totalorder %s23_s16, %s625_s1  ;;  %p631_p13 = scmp.lt.s32.totalorder %s625_s1, %s625_s1 }
  0x1f   :  { %p632_p0 = por %p631_p13, %p630_p12 }
  0x21   :  { %p633_p1 = pnand %p632_p0, %p626_p11 }
  0x23   :  { %636 = shalt.err (!%p633_p1)
}
  0x24   :  { %25 = dma.hbm_to_vmem [thread:$0]  %s860_s0, 128, %s23_s16, [#allocation3]  }
  0x25   :  { %s637_s30 = scalar_lea.hbm %s863_s3, 2048 }
  0x26   :  { %p638_p2 = scmp.ne.s32.totalorder %s863_s3, %s637_s30  ;;  %p641_p3 = scmp.lt.u32.totalorder %s637_s30, %s863_s3 }
  0x28   :  { %p643_p4 = pnand %p641_p3, %p638_p2 }
  0x2a   :  { %646 = shalt.err (!%p643_p4)
}
  0x2b   :  { %s647_s14 = scalar_lea.vmem %s46_s18, 2048  ;;  %p652_p6 = scmp.lt.s32.totalorder %s46_s18, %s46_s18 }
  0x2c   :  { %p648_p5 = scmp.ne.s32.totalorder %s46_s18, %s647_s14  ;;  %p653_p7 = scmp.lt.s32.totalorder %s647_s14, %s647_s14 }
  0x2e   :  { %p654_p8 = por %p653_p7, %p652_p6 }
  0x30   :  { %p655_p9 = pnand %p654_p8, %p648_p5 }
  0x32   :  { %658 = shalt.err (!%p655_p9)
}
  0x33   :  { %51 = dma.hbm_to_vmem [thread:$0]  %s863_s3, 2048, %s46_s18, [#allocation6], %s712_s11, %s712_s11, %s713_s12  }
  0x34   :  { %s716_s16 = smov [#allocation8]   ;;  %s659_s21 = scalar_lea.hbm %s865_s5, 2048 }
  0x35   :  { %s59_s17 = sshll.u32 %s716_s16, 4  ;;  %p660_p10 = scmp.ne.s32.totalorder %s865_s5, %s659_s21  ;;  %s60_s17 = int_to_ptr.vmem [resolvable:$true] %s59_s17 }
  0x36   :  { %p663_p11 = scmp.lt.u32.totalorder %s659_s21, %s865_s5 }
  0x38   :  { %p665_p12 = pnand %p663_p11, %p660_p10 }
  0x3a   :  { %668 = shalt.err (!%p665_p12)
}
  0x3b   :  { %s669_s1 = scalar_lea.vmem %s60_s17, 2048  ;;  %p674_p0 = scmp.lt.s32.totalorder %s60_s17, %s60_s17 }
  0x3c   :  { %p670_p13 = scmp.ne.s32.totalorder %s60_s17, %s669_s1  ;;  %p675_p1 = scmp.lt.s32.totalorder %s669_s1, %s669_s1 }
  0x3e   :  { %p676_p2 = por %p675_p1, %p674_p0 }
  0x40   :  { %p677_p3 = pnand %p676_p2, %p670_p13 }
  0x42   :  { %680 = shalt.err (!%p677_p3)
}
  0x43   :  { %65 = dma.hbm_to_vmem [thread:$0]  %s865_s5, 2048, %s60_s17, [#allocation9], %s712_s11, %s712_s11, %s713_s12  }
  0x44   :  { %703 = dma.done.wait [#allocation3], 128  }
  0x45   :  { %704 = vsyncadd [#allocation3], 4294967168 }
  0x46   :  { %705 = dma.done.wait [#allocation6], 2560  }
  0x47   :  { %706 = vsyncadd [#allocation6], 4294964736 }
  0x48   :  { %707 = dma.done.wait [#allocation9], 2048  }
  0x49   :  { %708 = vsyncadd [#allocation9], 4294965248  ;;  %v717_v0 = vmov 0.0|0.0   ;;  %vm718_vm0 = vmmov 0   ;;  %v719_v1 = vmov 0.0   ;;  %v81_v2 = vld [vmem:[#allocation5] sm:$0xff] }
  0x4a   :  { %517 = vmatprep.subr.bf16.mxu0 %v717_v0  ;;  %444 = vmatprep.mubr.msk.f32.mxu0 %vm718_vm0, %v719_v1  ;;  %v82_v3 = vld [vmem:[#allocation5 + $0x8] sm:$0xff]  ;;  %v83_v4 = vld [vmem:[#allocation5 + $0x10] sm:$0xff]  ;;  %v84_v6 = vld [vmem:[#allocation5 + $0x18] sm:$0xff]  ;;  %vm92_vm1 = vcmask 261120  }
  0x4b   :  { %523 = vmatprep.subr.bf16.mxu1 %v717_v0  ;;  %479 = vmatprep.mubr.msk.f32.mxu1 %vm718_vm0, %v719_v1  ;;  %v518_v5 = vpack.c.bf16 %v82_v3, %v81_v2  ;;  %v172_v7 = vld [vmem:[#allocation7] sm:$0xff]  ;;  %v173_v8 = vld [vmem:[#allocation7 + $0x8] sm:$0xff]  ;;  %v521_v9 = vpack.c.bf16 %v84_v6, %v83_v4  ;;  %v80_v11 = vld [vmem:[#allocation2] sm:$0xff] }
  0x4c   :  { %v524_v10 = vpack.c.bf16 %v173_v8, %v172_v7  ;;  %v174_v12 = vld [vmem:[#allocation7 + $0x10] sm:$0xff]  ;;  %v175_v13 = vld [vmem:[#allocation7 + $0x18] sm:$0xff]  ;;  %v176_v15 = vld [vmem:[#allocation7 + $0x20] sm:$0xff] }
  0x4d   :  { %519 = vmatpush3.bf16.msra.mxu0 %v518_v5  ;;  %v527_v14 = vpack.c.bf16 %v175_v13, %v174_v12  ;;  %v177_v16 = vld [vmem:[#allocation7 + $0x28] sm:$0xff]  ;;  %v178_v18 = vld [vmem:[#allocation7 + $0x30] sm:$0xff]  ;;  %v179_v19 = vld [vmem:[#allocation7 + $0x38] sm:$0xff] }
  0x4e   :  { %520 = vmatprep.subr.bf16.mxu0 %v717_v0  ;;  %525 = vmatpush3.bf16.msra.mxu1 %v524_v10  ;;  %v530_v17 = vpack.c.bf16 %v177_v16, %v176_v15  ;;  %v533_v20 = vpack.c.bf16 %v179_v19, %v178_v18  ;;  %v180_v21 = vld [vmem:[#allocation7 + $0x40] sm:$0xff]  ;;  %v181_v22 = vld [vmem:[#allocation7 + $0x48] sm:$0xff]  ;;  %v182_v24 = vld [vmem:[#allocation7 + $0x50] sm:$0xff] }
  0x4f   :  { %526 = vmatprep.subr.bf16.mxu1 %v717_v0  ;;  %v536_v23 = vpack.c.bf16 %v181_v22, %v180_v21  ;;  %v183_v25 = vld [vmem:[#allocation7 + $0x58] sm:$0xff]  ;;  %v184_v27 = vld [vmem:[#allocation7 + $0x60] sm:$0xff]  ;;  %v185_v28 = vld [vmem:[#allocation7 + $0x68] sm:$0xff] }
  0x50   :  { %v539_v26 = vpack.c.bf16 %v183_v25, %v182_v24  ;;  %v542_v29 = vpack.c.bf16 %v185_v28, %v184_v27  ;;  %v186_v30 = vld [vmem:[#allocation7 + $0x70] sm:$0xff]  ;;  %v187_v31 = vld [vmem:[#allocation7 + $0x78] sm:$0xff]  ;;  %v271_v33 = vld [vmem:[#allocation8] sm:$0xff] }
  0x51   :  { %522 = vmatpush3.bf16.msra.mxu0 %v521_v9  ;;  %v545_v32 = vpack.c.bf16 %v187_v31, %v186_v30  ;;  %v272_v34 = vld [vmem:[#allocation8 + $0x8] sm:$0xff]  ;;  %v391_v36 = vld [vmem:[%s862_s2] ss:$0 sm:$0xff]  ;;  %v273_v44 = vld [vmem:[#allocation8 + $0x10] sm:$0xff] }
  0x52   :  { %547 = vmatprep.subr.bf16.mxu0 %v717_v0  ;;  %528 = vmatpush3.bf16.msra.mxu1 %v527_v14  ;;  %v548_v35 = vpack.c.bf16 %v272_v34, %v271_v33  ;;  %v274_v45 = vld [vmem:[#allocation8 + $0x18] sm:$0xff]  ;;  %v275_v47 = vld [vmem:[#allocation8 + $0x20] sm:$0xff]  ;;  %v276_v48 = vld [vmem:[#allocation8 + $0x28] sm:$0xff] }
  0x53   :  { %529 = vmatprep.subr.bf16.mxu1 %v717_v0  ;;  %v551_v46 = vpack.c.bf16 %v274_v45, %v273_v44  ;;  %v554_v49 = vpack.c.bf16 %v276_v48, %v275_v47  ;;  %v277_v50 = vld [vmem:[#allocation8 + $0x30] sm:$0xff]  ;;  %v278_v51 = vld [vmem:[#allocation8 + $0x38] sm:$0xff]  ;;  %v279_v53 = vld [vmem:[#allocation8 + $0x40] sm:$0xff] }
  0x54   :  { %445 = vmatmul.mubr.msk.f32.vlgmr.msra.gmra.mrb[0].mxu0 %vm92_vm1, %v80_v11  ;;  %v557_v52 = vpack.c.bf16 %v278_v51, %v277_v50  ;;  %v280_v54 = vld [vmem:[#allocation8 + $0x48] sm:$0xff]  ;;  %v281_v56 = vld [vmem:[#allocation8 + $0x50] sm:$0xff]  ;;  %v282_v57 = vld [vmem:[#allocation8 + $0x58] sm:$0xff] }
  0x55   :  { %514 = vmatprep.mubr.msk.f32.mxu0 %vm718_vm0, %v719_v1  ;;  %549 = vmatpush3.bf16.msra.mxu0 %v548_v35  ;;  %v560_v55 = vpack.c.bf16 %v280_v54, %v279_v53  ;;  %v563_v58 = vpack.c.bf16 %v282_v57, %v281_v56  ;;  %v283_v59 = vld [vmem:[#allocation8 + $0x60] sm:$0xff]  ;;  %v284_v60 = vld [vmem:[#allocation8 + $0x68] sm:$0xff]  ;;  %v285_v62 = vld [vmem:[#allocation8 + $0x70] sm:$0xff] }
  0x56   :  { %531 = vmatpush3.bf16.msra.mxu1 %v530_v17  ;;  %550 = vmatprep.subr.bf16.mxu0 %v717_v0  ;;  %v566_v61 = vpack.c.bf16 %v284_v60, %v283_v59  ;;  %v286_v63 = vld [vmem:[#allocation8 + $0x78] sm:$0xff] }
  0x57   :  { %532 = vmatprep.subr.bf16.mxu1 %v717_v0  ;;  %v569_v1 = vpack.c.bf16 %v286_v63, %v285_v62  ;;  %v394_v2 = vld [vmem:[%s864_s4] ss:$0 sm:$0xff]  ;;  %s720_s4 = smov [#allocation10]  }
  0x58   :  { %v396_v10 = vld [vmem:[%s866_s6] ss:$0 sm:$0xff]  ;;  %s380_s28 = sshll.u32 %s720_s4, 4  ;;  %s381_s28 = int_to_ptr.vmem [resolvable:$true] %s380_s28 }
  0x59   :  { %552 = vmatpush3.bf16.msra.mxu0 %v551_v46  ;;  %s681_s29 = scalar_lea.vmem %s381_s28, 128  ;;  %p686_p5 = scmp.lt.s32.totalorder %s381_s28, %s381_s28 }
  0x5a   :  { %534 = vmatpush3.bf16.msra.mxu1 %v533_v20  ;;  %553 = vmatprep.subr.bf16.mxu0 %v717_v0  ;;  %p682_p4 = scmp.ne.s32.totalorder %s381_s28, %s681_s29  ;;  %p687_p6 = scmp.lt.s32.totalorder %s681_s29, %s681_s29 }
  0x5b   :  { %535 = vmatprep.subr.bf16.mxu1 %v717_v0 }
  0x5c   :  { %p688_p7 = por %p687_p6, %p686_p5 }
  0x5d   :  { %555 = vmatpush3.bf16.msra.mxu0 %v554_v49 }
  0x5e   :  { %537 = vmatpush3.bf16.msra.mxu1 %v536_v23  ;;  %556 = vmatprep.subr.bf16.mxu0 %v717_v0  ;;  %p689_p8 = pnand %p688_p7, %p682_p4 }
  0x5f   :  { %538 = vmatprep.subr.bf16.mxu1 %v717_v0 }
  0x61   :  { %558 = vmatpush3.bf16.msra.mxu0 %v557_v52 }
  0x62   :  { %540 = vmatpush3.bf16.msra.mxu1 %v539_v26  ;;  %559 = vmatprep.subr.bf16.mxu0 %v717_v0 }
  0x63   :  { %541 = vmatprep.subr.bf16.mxu1 %v717_v0 }
  0x65   :  { %561 = vmatpush3.bf16.msra.mxu0 %v560_v55 }
  0x66   :  { %543 = vmatpush3.bf16.msra.mxu1 %v542_v29  ;;  %562 = vmatprep.subr.bf16.mxu0 %v717_v0 }
  0x67   :  { %544 = vmatprep.subr.bf16.mxu1 %v717_v0 }
  0x69   :  { %564 = vmatpush3.bf16.msra.mxu0 %v563_v58 }
  0x6a   :  { %546 = vmatpush3.bf16.msra.mxu1 %v545_v32  ;;  %565 = vmatprep.subr.bf16.mxu0 %v717_v0 }
  0x6d   :  { %567 = vmatpush3.bf16.msra.mxu0 %v566_v61 }
  0x6e   :  { %568 = vmatprep.subr.bf16.mxu0 %v717_v0 }
  0x71   :  { %570 = vmatpush3.bf16.msra.mxu0 %v569_v1 }
 0x127   :  { %v162_v37 = vpop.f32.mrb[0].mxu0 }
 0x128   :  { %v163_v38 = vadd.f32 %v391_v36, %v162_v37  ;;  %v446_v39 = vpop.f32.mrb[1].mxu0 }
 0x12a   :  { %v393_v40 = vmul.f32 -1.442695, %v163_v38 }
 0x12c   :  { %581 = vpow2.f32 %v393_v40 }
 0x136   :  { %v582_v41 = vpop.eup %581 }
 0x137   :  { %v169_v42 = vadd.f32 1.0, %v582_v41 }
 0x139   :  { %583 = vrcp.f32 %v169_v42 }
 0x143   :  { %v584_v43 = vpop.eup %583 }
 0x144   :  { %480 = vmatmul.mubr.f32.vlgmr.msra.gmra.mrb[0].mxu1 %v584_v43 }
 0x217   :  { %v261_v3 = vpop.f32.mrb[0].mxu1 }
 0x218   :  { %v262_v4 = vadd.f32 %v394_v2, %v261_v3  ;;  %v481_v5 = vpop.f32.mrb[1].mxu1 }
 0x21a   :  { %v395_v6 = vmul.f32 -1.442695, %v262_v4 }
 0x21c   :  { %585 = vpow2.f32 %v395_v6 }
 0x226   :  { %v586_v7 = vpop.eup %585 }
 0x227   :  { %v268_v8 = vadd.f32 1.0, %v586_v7 }
 0x229   :  { %587 = vrcp.f32 %v268_v8 }
 0x233   :  { %v588_v9 = vpop.eup %587 }
 0x234   :  { %515 = vmatmul.mubr.f32.vlgmr.msra.gmra.mrb[2].mxu0 %v588_v9 }
 0x307   :  { %v360_v0 = vpop.f32.mrb[2].mxu0 }
 0x308   :  { %v361_v11 = vadd.f32 %v396_v10, %v360_v0  ;;  %v516_v12 = vpop.f32.mrb[3].mxu0 }
 0x30a   :  { %364 = vmax.xlane.f32.xlu0 %v361_v11 }
 0x397   :  { %v365_v13 = vpop.xlane.xlu0 %364 }
 0x398   :  { %v366_v14 = vsub.f32 %v361_v11, %v365_v13 }
 0x39a   :  { %v367_v15 = vmul.f32 1.442695, %v366_v14 }
 0x39c   :  { %589 = vpow2.f32 %v367_v15 }
 0x3a6   :  { %v590_v16 = vpop.eup %589 }
 0x3a7   :  { %369 = vadd.xlane.f32.xlu0 %v590_v16 }
 0x434   :  { %v370_v17 = vpop.xlane.xlu0 %369 }
 0x435   :  { %591 = vrcp.f32 %v370_v17 }
 0x43f   :  { %v592_v18 = vpop.eup %591 }
 0x440   :  { %v372_v19 = vmul.f32 %v592_v18, %v590_v16 }
 0x442   :  { %373 = vst [vmem:[#allocation10] sm:$0xff] %v372_v19 }
 0x443   :  { %692 = shalt.err (!%p689_p8)
}
 0x444   :  { %s693_s8 = scalar_lea.hbm %s867_s7, 128 }
 0x445   :  { %p694_p9 = scmp.ne.s32.totalorder %s867_s7, %s693_s8  ;;  %p697_p10 = scmp.lt.u32.totalorder %s693_s8, %s867_s7 }
 0x447   :  { %p699_p11 = pnand %p697_p10, %p694_p9 }
 0x449   :  { %702 = shalt.err (!%p699_p11)
}
 0x44a   :  { %383 = dma.vmem_to_hbm [thread:$0]  %s381_s28, 128, %s867_s7, [#allocation4]  }
 0x44b   :  { %709 = dma.done.wait [#allocation4], 128  }
 0x44c   :  { %710 = vsyncadd [#allocation4], 4294967168 }
 0x44d   :  { %387 = vsyncpa [#allocation3], 1 }
 0x44e   :  { %388 = vsyncpa [#allocation6], 1 }
 0x44f   :  { %389 = vsyncpa [#allocation9], 1 }
 0x450   :  { %390 = vsyncpa [#allocation4], 1 }

</bundles_post_ra>
